<compile_context>
chip_gen: v5e
topology: v5e:2x2
jax: 0.10.0
libtpu: 0.0.40
codegen_flags: <defaults>
</compile_context>

<pallas_src>
import functools

import jax
import jax.numpy as jnp
from jax.experimental import pallas as pl
from jax.experimental.pallas import tpu as pltpu

NZ = 6
DIMS = [NZ, 32, 64, 32, 16, 1]   # layer widths of the Generator MLP


def _round_up(x, m):
    return ((x + m - 1) // m) * m


# ----------------------------------------------------------------------------
# Packed-parameter layout (2 arrays -> 2 DMAs instead of 11)
# ----------------------------------------------------------------------------
# Weight pack (bf16): layers 1..4 in torch (out, in) layout, stacked along rows
# with every band starting at a multiple of 8 sublanes.
_W_BANDS = []
_r = 0
for _k in range(4):
    _W_BANDS.append((_r, _r + DIMS[_k + 1]))
    _r = _round_up(_r + DIMS[_k + 1], 8)
_WPACK_SHAPE = (_round_up(_r, 8), _round_up(max(DIMS[0:4]), 8))   # (144, 64)

# Misc pack (f32): cols 0..3 = biases b1..b4 (as (out,1) columns),
# col 4 = final weight W5 as a 16-long column, col 5 = final bias b5.
_MPACK_SHAPE = (_round_up(max(DIMS[1:5]), 8), 8)                  # (64, 8)


def pack_params(params):
    """Pack 5 torch-layout (W, b) pairs into (wpack bf16, mpack f32)."""
    assert len(params) == len(DIMS) - 1
    wpack = jnp.zeros(_WPACK_SHAPE, jnp.bfloat16)
    mpack = jnp.zeros(_MPACK_SHAPE, jnp.float32)
    for k in range(4):
        w, b = params[k]
        r0, r1 = _W_BANDS[k]
        wpack = wpack.at[r0:r1, 0:DIMS[k]].set(w.astype(jnp.bfloat16))
        mpack = mpack.at[0:DIMS[k + 1], k].set(b.astype(jnp.float32))
    w5, b5 = params[4]
    mpack = mpack.at[0:DIMS[4], 4].set(w5.reshape(-1).astype(jnp.float32))
    mpack = mpack.at[0:1, 5].set(b5.astype(jnp.float32))
    return wpack, mpack


# ----------------------------------------------------------------------------
# Kernel
# ----------------------------------------------------------------------------
def _make_kernel(chunk, n_chunks):
    (r1a, r1b), (r2a, r2b), (r3a, r3b), (r4a, r4b) = _W_BANDS
    d0, d1, d2, d3, d4 = DIMS[0], DIMS[1], DIMS[2], DIMS[3], DIMS[4]

    def kernel(x_ref, wp_ref, mp_ref, o_ref):
        # x_ref : (NZ, tile_b) bf16   -- batch on lanes
        # wp_ref: (144, 64)    bf16   -- packed layer-1..4 weights (out, in)
        # mp_ref: (64, 8)      f32    -- packed biases + final weight column
        # o_ref : (1, tile_b)  f32    -- lane-dense output row

        def layer(h, w, b):
            # (out, in) @ (in, C) on the MXU with f32 accumulation; bias add
            # and ReLU stay f32 (v5e has no bf16 VALU). Dropout = identity.
            y = jnp.dot(w, h.astype(jnp.bfloat16),
                        preferred_element_type=jnp.float32)
            return jnp.maximum(y + b, 0.0)

        # Static sub-chunk loop over the lane axis: bounds vreg live ranges so
        # the large batch tile does not turn into register spills.
        for c in range(n_chunks):
            lo = c * chunk
            h = x_ref[:, lo:lo + chunk]                                  # (6,  C)
            h = layer(h, wp_ref[r1a:r1b, 0:d0], mp_ref[0:d1, 0:1])       # (32, C)
            h = layer(h, wp_ref[r2a:r2b, 0:d1], mp_ref[0:d2, 1:2])       # (64, C)
            h = layer(h, wp_ref[r3a:r3b, 0:d2], mp_ref[0:d3, 2:3])       # (32, C)
            h = layer(h, wp_ref[r4a:r4b, 0:d3], mp_ref[0:d4, 3:4])       # (16, C)
            # Final Linear(16,1)+ReLU on VPU/XLU (MXU N=1 pass = pure padding);
            # result is produced directly in the lane-dense (1, C) orientation.
            y = jnp.sum(h * mp_ref[0:d4, 4:5], axis=0, keepdims=True)
            y = y + mp_ref[0:1, 5:6]
            o_ref[:, lo:lo + chunk] = jnp.maximum(y, 0.0).astype(o_ref.dtype)

    return kernel


# ----------------------------------------------------------------------------
# Wrapper
# ----------------------------------------------------------------------------
@functools.partial(jax.jit, static_argnames=("tile_b",))
def generator_forward(x, packed_params, *, tile_b=2048):
    """Generator forward. x: (B, NZ) f32 (torch layout); returns (B, 1) f32."""
    B = x.shape[0]
    assert x.shape == (B, NZ), x.shape
    wpack, mpack = packed_params

    # --- batch tiling -------------------------------------------------------
    tile_b = _round_up(max(128, min(int(tile_b), 4096)), 128)
    b_ceil = _round_up(B, 128)
    if b_ceil >= 2 * 128:
        # Keep >= 2 grid steps so "parallel" actually feeds both v7x cores.
        tile_b = min(tile_b, _round_up((b_ceil + 1) // 2, 128))
    else:
        tile_b = 128
    chunk = 256 if tile_b % 256 == 0 else 128    # vreg-pressure-bounded sub-chunk
    n_chunks = tile_b // chunk
    b_pad = _round_up(B, tile_b)
    num_tiles = b_pad // tile_b

    # --- input prep: one fused pad + transpose + cast ------------------------
    # (Callers already holding (NZ, B) bf16 can skip this entirely.)
    x_t = jnp.pad(x.astype(jnp.bfloat16), ((0, b_pad - B), (0, 0))).T   # (NZ, b_pad)

    flops = 2 * b_pad * sum(DIMS[k] * DIMS[k + 1] for k in range(len(DIMS) - 1))
    bytes_accessed = (x_t.size * 2 + b_pad * 4
                      + wpack.size * 2 + mpack.size * 4)

    out = pl.pallas_call(
        _make_kernel(chunk, n_chunks),
        out_shape=jax.ShapeDtypeStruct((1, b_pad), jnp.float32),
        grid=(num_tiles,),
        in_specs=[
            pl.BlockSpec((NZ, tile_b), lambda i: (0, i)),      # batch tile
            pl.BlockSpec(_WPACK_SHAPE, lambda i: (0, 0)),      # VMEM-resident weights
            pl.BlockSpec(_MPACK_SHAPE, lambda i: (0, 0)),      # VMEM-resident biases
        ],
        out_specs=pl.BlockSpec((1, tile_b), lambda i: (0, i)),  # lane-dense row
        compiler_params=pltpu.CompilerParams(
            dimension_semantics=("parallel",)),
        cost_estimate=pl.CostEstimate(
            flops=int(flops), transcendentals=0,
            bytes_accessed=int(bytes_accessed)),
    )(x_t, wpack, mpack)

    # (1, b_pad) lane-dense row -> (B, 1) column, dropping batch padding.
    return out.reshape(b_pad, 1)[:B]


# ----------------------------------------------------------------------------
# Init + reference
# ----------------------------------------------------------------------------
def init_params(key):
    """Torch-layout init mimicking nn.Linear default (U[-1/sqrt(fan_in), +])."""
    params = []
    for i in range(len(DIMS) - 1):
        fan_in, fan_out = DIMS[i], DIMS[i + 1]
        key, kw, kb = jax.random.split(key, 3)
        bound = 1.0 / jnp.sqrt(jnp.float32(fan_in))
        w = jax.random.uniform(kw, (fan_out, fan_in), jnp.float32, -bound, bound)
        b = jax.random.uniform(kb, (fan_out,), jnp.float32, -bound, bound)
        params.append((w, b))
    return params


def reference_forward(x, params):
    """Pure-JAX reference mirroring the kernel's bf16-matmul / f32-accumulate path."""
    h = x
    for (w, b) in params[:-1]:
        h = jnp.dot(h.astype(jnp.bfloat16), w.T.astype(jnp.bfloat16),
                    preferred_element_type=jnp.float32) + b
        h = jnp.maximum(h, 0.0)
    w5, b5 = params[-1]
    y = jnp.dot(h, w5.T, precision=jax.lax.Precision.HIGHEST) + b5
    return jnp.maximum(y, 0.0)


if __name__ == "__main__":
    key = jax.random.PRNGKey(0)
    key, kp = jax.random.split(key)
    params = init_params(kp)
    packed = pack_params(params)

    # Cases: single padded tile; multi-tile at the minimum tile size; and a
    # default-tile case exercising the multi-chunk inner loop + a 2-tile grid.
    for B, tile in [(8, 2048), (333, 128), (1000, 2048)]:
        key, kx = jax.random.split(key)
        x = jax.random.normal(kx, (B, NZ), jnp.float32)    # latent noise (B, nz=6)

        out = jax.block_until_ready(generator_forward(x, packed, tile_b=tile))
        ref = reference_forward(x, params)

        assert out.shape == (B, 1), out.shape
        err = float(jnp.max(jnp.abs(out - ref)))
        assert jnp.allclose(out, ref, atol=2e-3, rtol=2e-3), (B, tile, err)

    print("KERNEL_OK")
</pallas_src>

<mosaic_0001>
module attributes {stable_mosaic.version = 11 : i64} {
  func.func @kernel(%arg0: i32, %arg1: memref<6x128xbf16, #tpu.memory_space<vmem>>, %arg2: memref<144x64xbf16, #tpu.memory_space<vmem>>, %arg3: memref<64x8xf32, #tpu.memory_space<vmem>>, %arg4: memref<1x128xf32, #tpu.memory_space<vmem>>) attributes {dimension_semantics = [#tpu.dimension_semantics<parallel>], iteration_bounds = array<i64: 1>, scalar_prefetch = 0 : i64, scratch_operands = 0 : i64, tpu.core_type = #tpu.core_type<tc>, window_params = [{transform_indices = @transform_0, window_bounds = array<i64: 6, 128>}, {pipeline_mode = #tpu.pipeline_mode<synchronous>, transform_indices = @transform_1, window_bounds = array<i64: 144, 64>}, {pipeline_mode = #tpu.pipeline_mode<synchronous>, transform_indices = @transform_2, window_bounds = array<i64: 64, 8>}, {transform_indices = @transform_3, window_bounds = array<i64: 1, 128>}]} {
    %c0 = arith.constant 0 : index
    %c0_0 = arith.constant 0 : index
    %0 = vector.load %arg1[%c0, %c0_0] : memref<6x128xbf16, #tpu.memory_space<vmem>>, vector<6x128xbf16>
    %c0_1 = arith.constant 0 : index
    %c0_2 = arith.constant 0 : index
    %1 = vector.load %arg2[%c0_1, %c0_2] : memref<144x64xbf16, #tpu.memory_space<vmem>>, vector<32x6xbf16>
    %c0_3 = arith.constant 0 : index
    %c0_4 = arith.constant 0 : index
    %2 = vector.load %arg3[%c0_3, %c0_4] : memref<64x8xf32, #tpu.memory_space<vmem>>, vector<32x1xf32>
    %cst = arith.constant dense<0.000000e+00> : vector<32x128xf32>
    %3 = tpu.matmul %1, %0, %cst {dimension_numbers = #tpu.dot_dimension_numbers<[1], [0], [0], [1], [0, 0, 1, 1], [], []>} : vector<32x6xbf16>, vector<6x128xbf16>, vector<32x128xf32> -> vector<32x128xf32>
    %4 = vector.broadcast %2 : vector<32x1xf32> to vector<32x128xf32>
    %5 = arith.addf %3, %4 : vector<32x128xf32>
    %cst_5 = arith.constant 0.000000e+00 : f32
    %6 = vector.broadcast %cst_5 : f32 to vector<32x128xf32>
    %7 = arith.maximumf %5, %6 : vector<32x128xf32>
    %c32 = arith.constant 32 : index
    %c0_6 = arith.constant 0 : index
    %8 = vector.load %arg2[%c32, %c0_6] : memref<144x64xbf16, #tpu.memory_space<vmem>>, vector<64x32xbf16>
    %c0_7 = arith.constant 0 : index
    %c1 = arith.constant 1 : index
    %9 = vector.load %arg3[%c0_7, %c1] : memref<64x8xf32, #tpu.memory_space<vmem>>, vector<64x1xf32>
    %10 = arith.truncf %7 : vector<32x128xf32> to vector<32x128xbf16>
    %cst_8 = arith.constant dense<0.000000e+00> : vector<64x128xf32>
    %11 = tpu.matmul %8, %10, %cst_8 {dimension_numbers = #tpu.dot_dimension_numbers<[1], [0], [0], [1], [0, 0, 1, 1], [], []>} : vector<64x32xbf16>, vector<32x128xbf16>, vector<64x128xf32> -> vector<64x128xf32>
    %12 = vector.broadcast %9 : vector<64x1xf32> to vector<64x128xf32>
    %13 = arith.addf %11, %12 : vector<64x128xf32>
    %cst_9 = arith.constant 0.000000e+00 : f32
    %14 = vector.broadcast %cst_9 : f32 to vector<64x128xf32>
    %15 = arith.maximumf %13, %14 : vector<64x128xf32>
    %c96 = arith.constant 96 : index
    %c0_10 = arith.constant 0 : index
    %16 = vector.load %arg2[%c96, %c0_10] : memref<144x64xbf16, #tpu.memory_space<vmem>>, vector<32x64xbf16>
    %c0_11 = arith.constant 0 : index
    %c2 = arith.constant 2 : index
    %17 = vector.load %arg3[%c0_11, %c2] : memref<64x8xf32, #tpu.memory_space<vmem>>, vector<32x1xf32>
    %18 = arith.truncf %15 : vector<64x128xf32> to vector<64x128xbf16>
    %cst_12 = arith.constant dense<0.000000e+00> : vector<32x128xf32>
    %19 = tpu.matmul %16, %18, %cst_12 {dimension_numbers = #tpu.dot_dimension_numbers<[1], [0], [0], [1], [0, 0, 1, 1], [], []>} : vector<32x64xbf16>, vector<64x128xbf16>, vector<32x128xf32> -> vector<32x128xf32>
    %20 = vector.broadcast %17 : vector<32x1xf32> to vector<32x128xf32>
    %21 = arith.addf %19, %20 : vector<32x128xf32>
    %cst_13 = arith.constant 0.000000e+00 : f32
    %22 = vector.broadcast %cst_13 : f32 to vector<32x128xf32>
    %23 = arith.maximumf %21, %22 : vector<32x128xf32>
    %c128 = arith.constant 128 : index
    %c0_14 = arith.constant 0 : index
    %24 = vector.load %arg2[%c128, %c0_14] : memref<144x64xbf16, #tpu.memory_space<vmem>>, vector<16x32xbf16>
    %c0_15 = arith.constant 0 : index
    %c3 = arith.constant 3 : index
    %25 = vector.load %arg3[%c0_15, %c3] : memref<64x8xf32, #tpu.memory_space<vmem>>, vector<16x1xf32>
    %26 = arith.truncf %23 : vector<32x128xf32> to vector<32x128xbf16>
    %cst_16 = arith.constant dense<0.000000e+00> : vector<16x128xf32>
    %27 = tpu.matmul %24, %26, %cst_16 {dimension_numbers = #tpu.dot_dimension_numbers<[1], [0], [0], [1], [0, 0, 1, 1], [], []>} : vector<16x32xbf16>, vector<32x128xbf16>, vector<16x128xf32> -> vector<16x128xf32>
    %28 = vector.broadcast %25 : vector<16x1xf32> to vector<16x128xf32>
    %29 = arith.addf %27, %28 : vector<16x128xf32>
    %cst_17 = arith.constant 0.000000e+00 : f32
    %30 = vector.broadcast %cst_17 : f32 to vector<16x128xf32>
    %31 = arith.maximumf %29, %30 : vector<16x128xf32>
    %c0_18 = arith.constant 0 : index
    %c4 = arith.constant 4 : index
    %32 = vector.load %arg3[%c0_18, %c4] : memref<64x8xf32, #tpu.memory_space<vmem>>, vector<16x1xf32>
    %33 = vector.broadcast %32 : vector<16x1xf32> to vector<16x128xf32>
    %34 = arith.mulf %31, %33 : vector<16x128xf32>
    %cst_19 = arith.constant dense<0.000000e+00> : vector<128xf32>
    %35 = vector.multi_reduction <add>, %34, %cst_19 [0] : vector<16x128xf32> to vector<128xf32>
    %36 = vector.shape_cast %35 : vector<128xf32> to vector<1x128xf32>
    %c0_20 = arith.constant 0 : index
    %c5 = arith.constant 5 : index
    %37 = vector.load %arg3[%c0_20, %c5] : memref<64x8xf32, #tpu.memory_space<vmem>>, vector<1x1xf32>
    %38 = vector.broadcast %37 : vector<1x1xf32> to vector<1x128xf32>
    %39 = arith.addf %36, %38 : vector<1x128xf32>
    %cst_21 = arith.constant 0.000000e+00 : f32
    %40 = vector.broadcast %cst_21 : f32 to vector<1x128xf32>
    %41 = arith.maximumf %39, %40 : vector<1x128xf32>
    %c0_22 = arith.constant 0 : index
    %c0_23 = arith.constant 0 : index
    %42 = vector.load %arg4[%c0_22, %c0_23] : memref<1x128xf32, #tpu.memory_space<vmem>>, vector<1x128xf32>
    tpu.vector_store %arg4[%c0_22, %c0_23], %41 {strides = array<i32>} : memref<1x128xf32, #tpu.memory_space<vmem>>, vector<1x128xf32>,
    return
  }
  func.func @transform_0(%arg0: i32) -> (i32, i32) {
    %c0_i32 = arith.constant 0 : i32
    %c0_i32_0 = arith.constant 0 : i32
    return %c0_i32, %arg0 : i32, i32
  }
  func.func @transform_1(%arg0: i32) -> (i32, i32) {
    %c0_i32 = arith.constant 0 : i32
    %c0_i32_0 = arith.constant 0 : i32
    %c0_i32_1 = arith.constant 0 : i32
    return %c0_i32, %c0_i32_0 : i32, i32
  }
  func.func @transform_2(%arg0: i32) -> (i32, i32) {
    %c0_i32 = arith.constant 0 : i32
    %c0_i32_0 = arith.constant 0 : i32
    %c0_i32_1 = arith.constant 0 : i32
    return %c0_i32, %c0_i32_0 : i32, i32
  }
  func.func @transform_3(%arg0: i32) -> (i32, i32) {
    %c0_i32 = arith.constant 0 : i32
    %c0_i32_0 = arith.constant 0 : i32
    return %c0_i32, %arg0 : i32, i32
  }
}

</mosaic_0001>

<bundles_post_ra>
// kernel: generator_forward.1
= control target key start
LH: loop header
LB: loop body
LE: loop exit
PB: predicated region body
PF: predicated region fallthrough
CT: control target
= control target key end

     0   :  { %vm61_vm0 = vcmask 1042432   ;;  %v426_v1 = vmov 0   ;;  %vm54_vm1 = vcmask 48128   ;;  %v427_v12 = vmov 1   ;;  %s541_s0 = inlined_call_operand.vmem [shape: bf16[6,128], index: 0, kind: input, shape index: {}]   ;;  %s542_s1 = inlined_call_operand.vmem [shape: bf16[144,64], index: 1, kind: input, shape index: {}]   ;;  %s543_s2 = inlined_call_operand.vmem [shape: f32[64,8], index: 2, kind: input, shape index: {}]   ;;  %s544_s3 = inlined_call_operand.vmem [shape: f32[1,128], index: 3, kind: output, shape index: {}]  }
   0x1   :  { %v15_v0 = vld [vmem:[%s541_s0] sm:$0x7]  ;;  %413 = vset.pattern.permute.xlu1 %v426_v1  ;;  %412 = vset.pattern.permute.xlu0 %v426_v1  ;;  %v467_v5 = vld [vmem:[%s543_s2 + $0x10] sm:$0xff]  ;;  %v473_v6 = vld [vmem:[%s543_s2 + $0x8] sm:$0xff]  ;;  %vm166_vm2 = vcmask 261120   ;;  %v428_v49 = vmov 2  }
   0x2   :  { %v458_v2 = vld [vmem:[%s543_s2] sm:$0xff]  ;;  %v63_v3 = vsel %vm61_vm0, %v15_v0, 0  ;;  %36 = vperm.xlu0 %412, %v467_v5   ;;  %v478_v7 = vld [vmem:[%s543_s2 + $0x18] sm:$0xff]  ;;  %v396_v8 = vld [vmem:[%s542_s1 + $0x8] sm:$0xff]  ;;  %414 = vset.pattern.permute.xlu2 %v427_v12  ;;  %vm250_vm3 = vcmask 523264  }
   0x3   :  { %v395_v4 = vld [vmem:[%s542_s1] sm:$0xff]  ;;  %26 = vperm.xlu1 %413, %v458_v2   ;;  %72 = vmatpush.bf16.msra.mxu0 %v63_v3  ;;  %v102_v10 = vld [vmem:[%s543_s2 + $0x30] sm:$0xff]  ;;  %v103_v18 = vld [vmem:[%s543_s2 + $0x38] sm:$0xff] }
   0x4   :  { %v100_v11 = vld [vmem:[%s543_s2 + $0x20] sm:$0xff]  ;;  %138 = vperm.xlu2 %414, %v102_v10   ;;  %v101_v19 = vld [vmem:[%s543_s2 + $0x28] sm:$0xff]  ;;  %v397_v32 = vld [vmem:[%s542_s1 + $0x10] sm:$0xff] }
   0x5   :  { %v400_v33 = vld [vmem:[%s542_s1 + $0x28] sm:$0xff]  ;;  %v398_v34 = vld [vmem:[%s542_s1 + $0x18] sm:$0xff]  ;;  %v399_v35 = vld [vmem:[%s542_s1 + $0x20] sm:$0xff] }
   0x6   :  { %358 = vmatmul.msk.bf16.vlgmr.msra.gmra.mxu0 %vm54_vm1, %v395_v4 }
   0xa   :  { %41 = vperm.xlu0 %412, %v478_v7  }
   0xb   :  { %31 = vperm.xlu1 %413, %v473_v6  }
   0xc   :  { %143 = vperm.xlu2 %414, %v103_v18   ;;  %v337_v18 = vld [vmem:[%s543_s2] sm:$0x1] }
  0x12   :  { %415 = vset.pattern.permute.xlu0 %v427_v12 }
  0x13   :  { %128 = vperm.xlu0 %415, %v100_v11   ;;  %416 = vset.pattern.permute.xlu1 %v427_v12  ;;  %v401_v11 = vld [vmem:[%s542_s1 + $0x30] sm:$0xff]  ;;  %v402_v12 = vld [vmem:[%s542_s1 + $0x38] sm:$0xff] }
  0x14   :  { %133 = vperm.xlu1 %416, %v101_v19   ;;  %118 = vperm.xlu2 %414, %v467_v5  }
  0x16   :  { %359 = vmatmul.msk.bf16.gmra.mxu0 %vm54_vm1, %v396_v8 }
  0x1b   :  { %113 = vperm.xlu0 %415, %v473_v6  }
  0x1c   :  { %123 = vperm.xlu1 %416, %v478_v7   ;;  %108 = vperm.xlu2 %414, %v458_v2  }
  0x23   :  { %419 = vset.pattern.permute.xlu0 %v428_v49 }
  0x24   :  { %417 = vset.pattern.permute.xlu1 %v428_v49  ;;  %225 = vperm.xlu0 %419, %v458_v2  }
  0x25   :  { %233 = vperm.xlu1 %417, %v467_v5   ;;  %418 = vset.pattern.permute.xlu2 %v428_v49 }
  0x26   :  { %237 = vperm.xlu2 %418, %v478_v7  }
  0x2d   :  { %229 = vperm.xlu1 %417, %v473_v6  }
  0x5e   :  { %v139_v37 = vpop.permute.xlu2 %138 }
  0x66   :  { %v144_v41 = vpop.permute.xlu2 %143 }
  0x6e   :  { %v119_v53 = vpop.permute.xlu2 %118 }
  0x74   :  { %v37_v15 = vpop.permute.xlu0 %36 }
  0x75   :  { %v27_v14 = vpop.permute.xlu1 %26 }
  0x76   :  { %v109_v63 = vpop.permute.xlu2 %108 }
  0x7c   :  { %v42_v21 = vpop.permute.xlu0 %41 }
  0x7d   :  { %v32_v17 = vpop.permute.xlu1 %31 }
  0x83   :  { %v74_v9 = vpop.f32.mrf.mxu0 }
  0x84   :  { %v75_v25 = vadd.f32 %v74_v9, %v27_v14  ;;  %v429_v14 = vmov 3  }
  0x85   :  { %v129_v51 = vpop.permute.xlu0 %128  ;;  %421 = vset.pattern.permute.xlu1 %v429_v14  ;;  %420 = vset.pattern.permute.xlu2 %v429_v14 }
  0x86   :  { %v84_v30 = vmax.f32 %v75_v25, 0.0  ;;  %v134_v50 = vpop.permute.xlu1 %133  ;;  %293 = vperm.xlu1 %421, %v473_v6   ;;  %288 = vperm.xlu2 %420, %v458_v2  }
  0x8b   :  { %v76_v13 = vpop.f32.mrf.mxu0 }
  0x8c   :  { %v77_v23 = vadd.f32 %v76_v13, %v32_v17 }
  0x8d   :  { %v114_v59 = vpop.permute.xlu0 %113 }
  0x8e   :  { %v85_v28 = vmax.f32 %v77_v23, 0.0  ;;  %v124_v54 = vpop.permute.xlu1 %123 }
  0x90   :  { %v104_v31 = vpack.c.bf16 %v85_v28, %v84_v30 }
  0x93   :  { %v79_v16 = vpop.f32.mrf.mxu0 }
  0x94   :  { %v80_v20 = vadd.f32 %v79_v16, %v37_v15  ;;  %v430_v15 = vmov 4  }
  0x95   :  { %423 = vset.pattern.permute.xlu0 %v430_v15  ;;  %422 = vset.pattern.permute.xlu2 %v430_v15 }
  0x96   :  { %v86_v26 = vmax.f32 %v80_v20, 0.0  ;;  %325 = vperm.xlu0 %423, %v473_v6   ;;  %v431_v20 = vmov 5   ;;  %321 = vperm.xlu2 %422, %v458_v2   ;;  %v226_v6 = vpop.permute.xlu0 %225 }
  0x97   :  { %v234_v17 = vpop.permute.xlu1 %233  ;;  %424 = vset.pattern.permute.xlu1 %v431_v20 }
  0x98   :  { %340 = vperm.xlu1 %424, %v337_v18  }
  0x9b   :  { %v81_v22 = vpop.f32.mrf.mxu0 }
  0x9c   :  { %v82_v24 = vadd.f32 %v81_v22, %v42_v21  ;;  %v238_v22 = vpop.permute.xlu2 %237 }
  0x9e   :  { %v87_v27 = vmax.f32 %v82_v24, 0.0  ;;  %425 = vset.pattern.permute.xlu0 %v431_v20 }
  0x9f   :  { %v230_v21 = vpop.permute.xlu1 %229 }
  0xa0   :  { %v105_v29 = vpack.c.bf16 %v87_v27, %v86_v26 }
  0xa2   :  { %185 = vmatpush.bf16.msra.mxu1 %v105_v29  ;;  %404 = vmatpush.bf16.msra.mxu3 %v105_v29 }
  0xa6   :  { %186 = vmatpush.bf16.msra.mxu1 %v104_v31  ;;  %405 = vmatpush.bf16.msra.mxu3 %v104_v31 }
  0xa9   :  { %376 = vmatmul.msk.bf16.vlgmr.msra.gmra.mxu1 %vm166_vm2, %v397_v32  ;;  %379 = vmatmul.msk.bf16.vlgmr.msra.gmra.mxu3 %vm166_vm2, %v400_v33 }
  0xb9   :  { %377 = vmatmul.msk.bf16.gmra.mxu1 %vm166_vm2, %v398_v34  ;;  %v403_v34 = vld [vmem:[%s542_s1 + $0x40] sm:$0xff] }
  0xc9   :  { %378 = vmatmul.msk.bf16.gmra.mxu1 %vm166_vm2, %v399_v35 }
  0xe0   :  { %v289_v35 = vpop.permute.xlu2 %288 }
 0x126   :  { %v188_v36 = vpop.f32.mrf.mxu1 }
 0x127   :  { %v189_v4 = vadd.f32 %v188_v36, %v109_v63 }
 0x129   :  { %v208_v9 = vmax.f32 %v189_v4, 0.0 }
 0x12c   :  { %v203_v38 = vpop.f32.mrf.mxu3 }
 0x12d   :  { %v204_v40 = vadd.f32 %v203_v38, %v139_v37  ;;  %v294_v37 = vpop.permute.xlu1 %293 }
 0x12e   :  { %v190_v39 = vpop.f32.mrf.mxu1 }
 0x12f   :  { %v214_v43 = vmax.f32 %v204_v40, 0.0  ;;  %v191_v0 = vadd.f32 %v190_v39, %v114_v59 }
 0x131   :  { %v209_v7 = vmax.f32 %v191_v0, 0.0 }
 0x133   :  { %v220_v10 = vpack.c.bf16 %v209_v7, %v208_v9 }
 0x134   :  { %v205_v42 = vpop.f32.mrf.mxu3 }
 0x135   :  { %v206_v44 = vadd.f32 %v205_v42, %v144_v41  ;;  %v322_v41 = vpop.permute.xlu2 %321  ;;  %v326_v42 = vpop.permute.xlu0 %325 }
 0x136   :  { %v193_v45 = vpop.f32.mrf.mxu1 }
 0x137   :  { %v215_v46 = vmax.f32 %v206_v44, 0.0  ;;  %v194_v60 = vadd.f32 %v193_v45, %v119_v53 }
 0x139   :  { %v223_v47 = vpack.c.bf16 %v215_v46, %v214_v43  ;;  %v210_v5 = vmax.f32 %v194_v60, 0.0 }
 0x13b   :  { %261 = vmatpush.bf16.msra.mxu2 %v223_v47 }
 0x13e   :  { %v195_v48 = vpop.f32.mrf.mxu1 }
 0x13f   :  { %v196_v57 = vadd.f32 %v195_v48, %v124_v54 }
 0x141   :  { %v211_v1 = vmax.f32 %v196_v57, 0.0 }
 0x143   :  { %v221_v8 = vpack.c.bf16 %v211_v1, %v210_v5 }
 0x146   :  { %v198_v52 = vpop.f32.mrf.mxu1 }
 0x147   :  { %v199_v55 = vadd.f32 %v198_v52, %v129_v51  ;;  %v341_v52 = vpop.permute.xlu1 %340 }
 0x149   :  { %v212_v61 = vmax.f32 %v199_v55, 0.0 }
 0x14e   :  { %v200_v56 = vpop.f32.mrf.mxu1 }
 0x14f   :  { %v201_v58 = vadd.f32 %v200_v56, %v134_v50 }
 0x151   :  { %v213_v62 = vmax.f32 %v201_v58, 0.0 }
 0x153   :  { %v222_v3 = vpack.c.bf16 %v213_v62, %v212_v61 }
 0x155   :  { %262 = vmatpush.bf16.msra.mxu2 %v222_v3 }
 0x159   :  { %263 = vmatpush.bf16.msra.mxu2 %v221_v8 }
 0x15d   :  { %264 = vmatpush.bf16.msra.mxu2 %v220_v10 }
 0x160   :  { %388 = vmatmul.msk.bf16.vlgmr.msra.gmra.mxu2 %vm250_vm3, %v401_v11 }
 0x170   :  { %389 = vmatmul.msk.bf16.gmra.mxu2 %vm250_vm3, %v402_v12 }
 0x1e3   :  { %v266_v13 = vpop.f32.mrf.mxu2 }
 0x1e4   :  { %v267_v27 = vadd.f32 %v266_v13, %v226_v6 }
 0x1e6   :  { %v276_v32 = vmax.f32 %v267_v27, 0.0 }
 0x1eb   :  { %v268_v16 = vpop.f32.mrf.mxu2 }
 0x1ec   :  { %v269_v25 = vadd.f32 %v268_v16, %v230_v21 }
 0x1ee   :  { %v277_v30 = vmax.f32 %v269_v25, 0.0 }
 0x1f0   :  { %v284_v33 = vpack.c.bf16 %v277_v30, %v276_v32 }
 0x1f3   :  { %v271_v19 = vpop.f32.mrf.mxu2 }
 0x1f4   :  { %v272_v23 = vadd.f32 %v271_v19, %v234_v17 }
 0x1f6   :  { %v278_v28 = vmax.f32 %v272_v23, 0.0 }
 0x1fb   :  { %v273_v24 = vpop.f32.mrf.mxu2 }
 0x1fc   :  { %v274_v26 = vadd.f32 %v273_v24, %v238_v22 }
 0x1fe   :  { %v279_v29 = vmax.f32 %v274_v26, 0.0 }
 0x200   :  { %v285_v31 = vpack.c.bf16 %v279_v29, %v278_v28 }
 0x202   :  { %310 = vmatpush.bf16.msrb.mxu3 %v285_v31 }
 0x206   :  { %311 = vmatpush.bf16.msrb.mxu3 %v284_v33 }
 0x209   :  { %394 = vmatmul.msk.bf16.vlgmr.msrb.gmra.mxu3 %vm166_vm2, %v403_v34 }
 0x28c   :  { %v313_v2 = vpop.f32.mrf.mxu3 }
 0x28d   :  { %v314_v36 = vadd.f32 %v313_v2, %v289_v35 }
 0x28f   :  { %v318_v39 = vmax.f32 %v314_v36, 0.0 }
 0x291   :  { %v328_v44 = vmul.f32 %v322_v41, %v318_v39 }
 0x294   :  { %v315_v38 = vpop.f32.mrf.mxu3 }
 0x295   :  { %v316_v40 = vadd.f32 %v315_v38, %v294_v37 }
 0x297   :  { %v319_v43 = vmax.f32 %v316_v40, 0.0 }
 0x299   :  { %v329_v45 = vmul.f32 %v326_v42, %v319_v43 }
 0x29b   :  { %v330_v46 = vadd.f32 %v329_v45, %v328_v44 }
 0x29d   :  { %v331_v47 = vrot.slane %v330_v46, 4 }
 0x29f   :  { %v332_v48 = vadd.f32 %v331_v47, %v330_v46 }
 0x2a1   :  { %v333_v49 = vrot.slane %v332_v48, 2 }
 0x2a3   :  { %v334_v50 = vadd.f32 %v333_v49, %v332_v48 }
 0x2a5   :  { %v335_v51 = vrot.slane %v334_v50, 1 }
 0x2a7   :  { %v336_v53 = vadd.f32 %v335_v51, %v334_v50 }
 0x2a9   :  { %v343_v54 = vadd.f32 %v341_v52, %v336_v53 }
 0x2ab   :  { %v344_v55 = vmax.f32 %v343_v54, 0.0 }
 0x2ad   :  { %345 = vst [vmem:[%s544_s3] sm:$0x1] %v344_v55 }

</bundles_post_ra>
